<compile_context>
chip_gen: v7x
topology: tpu7x:2x2x1
jax: 0.10.0
libtpu: 0.0.40
codegen_flags: <defaults>
</compile_context>

<pallas_src>
import functools

import jax
import jax.numpy as jnp
from jax.experimental import pallas as pl
from jax.experimental.pallas import tpu as pltpu


def _cdiv(a, b):
    return -(-a // b)


def _round_up(a, m):
    return _cdiv(a, m) * m


def _vmem_capacity_bytes(default=64 << 20):
    """Physical VMEM per TensorCore; conservative fallback (v7x) if unknown."""
    try:
        info = pltpu.get_tpu_info()
        for name in ("vmem_capacity_bytes", "vmem_size_bytes", "vmem_bytes"):
            cap = getattr(info, name, None)
            if cap:
                return int(cap)
    except Exception:
        pass
    return default


def _pick_spatial_tile(C, HW, itemsize, budget_bytes):
    """Largest 128-multiple spatial tile within the VMEM block budget, balanced
    so the tile count divides the spatial extent as evenly as possible.
    HW <= 128 falls back to the full row (full-dim blocks waive alignment)."""
    if HW <= 128:
        return HW
    hw_floor = (HW // 128) * 128
    cap = max(128, (budget_bytes // (C * itemsize)) // 128 * 128)
    ts_cap = min(cap, hw_floor)
    k = _cdiv(HW, ts_cap)
    ts = min(ts_cap, _round_up(_cdiv(HW, k), 128))
    return max(128, ts)


def _pool_kernel(x_ref, o_ref, acc_ref, *, ts, seg, hw, k_half, need_mask):
    """One (b, split, k) grid step.

    x_ref  : (C, TS)   spatial tile of sample b (lane-dense)
    o_ref  : (1, C)    per-(sample, split) partial channel sum (f32)
    acc_ref: (C, seg)  running-sum strip (VMEM scratch, plain VPU adds)
    """
    s = pl.program_id(1)
    k = pl.program_id(2)

    @pl.when(k == 0)
    def _zero():
        acc_ref[...] = jnp.zeros_like(acc_ref)

    c = acc_ref.shape[0]
    nseg = ts // seg
    # Global spatial offset of the first element of this (logical) tile.
    base = (s * k_half + k) * ts

    if need_mask:
        lane = jax.lax.broadcasted_iota(jnp.int32, (c, seg), 1)

    def add_segment(start):
        v = x_ref[:, pl.ds(start, seg)].astype(jnp.float32)
        if need_mask:
            # Masks both the ragged spatial tail and fully-out-of-range
            # (clamped duplicate) tiles introduced by the NSPLIT padding.
            v = jnp.where(base + start + lane < hw, v, 0.0)
        acc_ref[...] += v

    if nseg <= 32:
        for j in range(nseg):          # fully unrolled VPU adds
            add_segment(j * seg)
    else:
        def body(j, carry):
            add_segment(pl.multiple_of(j * seg, seg))
            return carry
        jax.lax.fori_loop(0, nseg, body, None)

    @pl.when(k == k_half - 1)
    def _finalize():
        # One-time lane-reduce + sublane->lane relayout per (b, split).
        o_ref[...] = jnp.sum(acc_ref[...], axis=-1)[None, :]


def channel_gate(x, w1, b1, gamma, beta, running_mean, running_var, w2, b2,
                 *, eps=1e-5, expand=True):
    """BAM ChannelGate forward (eval-mode BN). x: (B, C, H, W).

    Returns (B, C, H, W) if expand=True (matches `expand_as(input)`), else the
    raw (B, C) gate (preferred: lets the caller fuse the broadcast/gate-apply).
    """
    B, C, H, W = x.shape
    HW = H * W
    f32 = jnp.float32
    itemsize = x.dtype.itemsize

    # --- Fold eval-mode BatchNorm1d into the first Linear (host side) ---
    scale = gamma.reshape(-1).astype(f32) * jax.lax.rsqrt(
        running_var.reshape(-1).astype(f32) + eps)                       # (mid,)
    w1f = (w1.astype(f32) * scale[:, None]).T                            # (C, mid)
    b1f = ((b1.reshape(-1).astype(f32) - running_mean.reshape(-1).astype(f32))
           * scale + beta.reshape(-1).astype(f32))[None, :]              # (1, mid)
    w2t = w2.astype(f32).T                                               # (mid, C)
    b2r = b2.reshape(-1).astype(f32)[None, :]                            # (1, C)

    # --- Generation-aware tile sizing (HBM-bandwidth-bound kernel) ---
    vmem_cap = _vmem_capacity_bytes()
    block_budget = max(4 << 20, vmem_cap // 5)        # ~12.8 MiB v7x, ~25.6 MiB v5e/v6e
    TS = _pick_spatial_tile(C, HW, itemsize, block_budget)
    seg = 128 if TS % 128 == 0 else TS
    K_total = _cdiv(HW, TS)

    # Split the spatial reduction for v7x megacore balance at small/odd batch.
    nsplit = 2 if (K_total >= 2 and (B < 2 or B % 2 == 1)) else 1
    k_half = _cdiv(K_total, nsplit)
    need_mask = (nsplit * k_half * TS) != HW

    block_bytes = C * TS * itemsize
    vmem_limit = int(min(vmem_cap * 3 // 4,
                         max(32 << 20, 2 * block_bytes + (8 << 20))))

    # --- Lane-dense layout: flatten spatial dims (free reshape in HBM) ---
    x3 = x.reshape(B, C, HW)

    if nsplit == 1:
        x_index_map = lambda b, s, k: (b, 0, k)
    else:
        last_tile = K_total - 1
        x_index_map = lambda b, s, k: (b, 0, jnp.minimum(s * k_half + k, last_tile))

    kernel = functools.partial(_pool_kernel, ts=TS, seg=seg, hw=HW,
                               k_half=k_half, need_mask=need_mask)

    sums = pl.pallas_call(
        kernel,
        out_shape=jax.ShapeDtypeStruct((B, nsplit, 1, C), f32),
        grid_spec=pltpu.PrefetchScalarGridSpec(
            num_scalar_prefetch=0,
            grid=(B, nsplit, k_half),
            in_specs=[pl.BlockSpec((None, C, TS), x_index_map)],
            out_specs=pl.BlockSpec((None, None, 1, C), lambda b, s, k: (b, s, 0, 0)),
            scratch_shapes=[pltpu.VMEM((C, seg), f32)],
        ),
        compiler_params=pltpu.CompilerParams(
            dimension_semantics=("parallel", "parallel", "arbitrary"),
            vmem_limit_bytes=vmem_limit),
        cost_estimate=pl.CostEstimate(
            flops=B * C * HW,
            transcendentals=0,
            bytes_accessed=B * C * HW * itemsize + B * nsplit * C * 4),
    )(x3)

    # --- Mean + tiny MLP epilogue as one batched XLA matmul on (B, C) ---
    pooled = sums.reshape(B, nsplit, C).sum(axis=1) * (1.0 / HW)         # (B, C)
    h = jnp.maximum(pooled @ w1f + b1f, 0.0)                             # (B, mid)
    gate = (h @ w2t + b2r).astype(x.dtype)                               # (B, C)

    if expand:
        # expand_as(input): plain XLA broadcast (fuses with downstream consumers)
        # instead of a redundant B*C*H*W HBM write from the kernel.
        return jnp.broadcast_to(gate[:, :, None, None], (B, C, H, W))
    return gate


if __name__ == "__main__":
    # Small shapes consistent with the module: reduction_ratio=16 needs C >= 16.
    B, C, H, W = 2, 64, 16, 16
    reduction_ratio = 16
    mid = C // reduction_ratio                                  # 4

    key = jax.random.PRNGKey(0)
    kx, kw1, kb1, kw2, kb2, kg, kbt, krm, krv = jax.random.split(key, 9)

    x = jax.random.normal(kx, (B, C, H, W), dtype=jnp.float32)

    # PyTorch-shaped parameters (nn.Linear / nn.BatchNorm1d).
    w1 = jax.random.normal(kw1, (mid, C), dtype=jnp.float32) * 0.1        # init_fc.fc.weight
    b1 = jax.random.normal(kb1, (mid,), dtype=jnp.float32) * 0.1          # init_fc.fc.bias
    gamma = 1.0 + 0.1 * jax.random.normal(kg, (mid,), dtype=jnp.float32)  # bn.weight
    beta = 0.1 * jax.random.normal(kbt, (mid,), dtype=jnp.float32)        # bn.bias
    rm = 0.05 * jax.random.normal(krm, (mid,), dtype=jnp.float32)         # bn.running_mean
    rv = 0.5 + 0.5 * jnp.abs(jax.random.normal(krv, (mid,), dtype=jnp.float32))  # bn.running_var
    w2 = jax.random.normal(kw2, (C, mid), dtype=jnp.float32) * 0.1        # final_fc.weight
    b2 = jax.random.normal(kb2, (C,), dtype=jnp.float32) * 0.1            # final_fc.bias

    out = channel_gate(x, w1, b1, gamma, beta, rm, rv, w2, b2)
    jax.block_until_ready(out)

    # Pure-JAX reference (eval-mode BN, matching PyTorch module semantics).
    p_ref = jnp.mean(x, axis=(2, 3))
    h_ref = p_ref @ w1.T + b1
    h_ref = (h_ref - rm) * jax.lax.rsqrt(rv + 1e-5) * gamma + beta
    h_ref = jnp.maximum(h_ref, 0.0)
    y_ref = h_ref @ w2.T + b2
    ref = jnp.broadcast_to(y_ref[:, :, None, None], (B, C, H, W))

    assert out.shape == (B, C, H, W), out.shape
    assert jnp.allclose(out, ref, atol=1e-4, rtol=1e-4), "mismatch vs reference"

    print("KERNEL_OK")
</pallas_src>

<mosaic_0001>
module attributes {stable_mosaic.version = 11 : i64} {
  func.func @_pool_kernel(%arg0: i32, %arg1: i32, %arg2: i32, %arg3: memref<1x64x256xf32, #tpu.memory_space<vmem>>, %arg4: memref<1x1x1x64xf32, #tpu.memory_space<vmem>>, %arg5: memref<64x128xf32, #tpu.memory_space<vmem>>) attributes {dimension_semantics = [#tpu.dimension_semantics<parallel>, #tpu.dimension_semantics<parallel>, #tpu.dimension_semantics<arbitrary>], iteration_bounds = array<i64: 2, 1, 1>, scalar_prefetch = 0 : i64, scratch_operands = 1 : i64, tpu.core_type = #tpu.core_type<tc>, window_params = [{transform_indices = @transform_0, window_bounds = array<i64: 1, 64, 256>}, {transform_indices = @transform_1, window_bounds = array<i64: 1, 1, 1, 64>}]} {
    %c0_i32 = arith.constant 0 : i32
    %0 = arith.cmpi eq, %arg2, %c0_i32 : i32
    %1 = arith.extui %0 : i1 to i32
    %c0_i32_0 = arith.constant 0 : i32
    %2 = arith.cmpi ne, %1, %c0_i32_0 : i32
    scf.if %2 {
      %cst = arith.constant 0.000000e+00 : f32
      %16 = vector.broadcast %cst : f32 to vector<64x128xf32>
      %c0_15 = arith.constant 0 : index
      %c0_16 = arith.constant 0 : index
      %17 = vector.load %arg5[%c0_15, %c0_16] : memref<64x128xf32, #tpu.memory_space<vmem>>, vector<64x128xf32>
      tpu.vector_store %arg5[%c0_15, %c0_16], %16 {strides = array<i32>} : memref<64x128xf32, #tpu.memory_space<vmem>>, vector<64x128xf32>,
    } else {
    }
    %c0 = arith.constant 0 : index
    %c0_1 = arith.constant 0 : index
    %c0_2 = arith.constant 0 : index
    %3 = vector.load %arg3[%c0, %c0_1, %c0_2] : memref<1x64x256xf32, #tpu.memory_space<vmem>>, vector<1x64x128xf32>
    %4 = vector.shape_cast %3 : vector<1x64x128xf32> to vector<64x128xf32>
    %c0_3 = arith.constant 0 : index
    %c0_4 = arith.constant 0 : index
    %5 = vector.load %arg5[%c0_3, %c0_4] : memref<64x128xf32, #tpu.memory_space<vmem>>, vector<64x128xf32>
    %6 = arith.addf %5, %4 : vector<64x128xf32>
    %c0_5 = arith.constant 0 : index
    %c0_6 = arith.constant 0 : index
    %7 = vector.load %arg5[%c0_5, %c0_6] : memref<64x128xf32, #tpu.memory_space<vmem>>, vector<64x128xf32>
    tpu.vector_store %arg5[%c0_5, %c0_6], %6 {strides = array<i32>} : memref<64x128xf32, #tpu.memory_space<vmem>>, vector<64x128xf32>,
    %c0_7 = arith.constant 0 : index
    %c0_8 = arith.constant 0 : index
    %c128 = arith.constant 128 : index
    %8 = vector.load %arg3[%c0_7, %c0_8, %c128] : memref<1x64x256xf32, #tpu.memory_space<vmem>>, vector<1x64x128xf32>
    %9 = vector.shape_cast %8 : vector<1x64x128xf32> to vector<64x128xf32>
    %c0_9 = arith.constant 0 : index
    %c0_10 = arith.constant 0 : index
    %10 = vector.load %arg5[%c0_9, %c0_10] : memref<64x128xf32, #tpu.memory_space<vmem>>, vector<64x128xf32>
    %11 = arith.addf %10, %9 : vector<64x128xf32>
    %c0_11 = arith.constant 0 : index
    %c0_12 = arith.constant 0 : index
    %12 = vector.load %arg5[%c0_11, %c0_12] : memref<64x128xf32, #tpu.memory_space<vmem>>, vector<64x128xf32>
    tpu.vector_store %arg5[%c0_11, %c0_12], %11 {strides = array<i32>} : memref<64x128xf32, #tpu.memory_space<vmem>>, vector<64x128xf32>,
    %c0_i32_13 = arith.constant 0 : i32
    %13 = arith.cmpi eq, %arg2, %c0_i32_13 : i32
    %14 = arith.extui %13 : i1 to i32
    %c0_i32_14 = arith.constant 0 : i32
    %15 = arith.cmpi ne, %14, %c0_i32_14 : i32
    scf.if %15 {
      %c0_15 = arith.constant 0 : index
      %c0_16 = arith.constant 0 : index
      %16 = vector.load %arg5[%c0_15, %c0_16] : memref<64x128xf32, #tpu.memory_space<vmem>>, vector<64x128xf32>
      %cst = arith.constant dense<0.000000e+00> : vector<64xf32>
      %17 = vector.multi_reduction <add>, %16, %cst [1] : vector<64x128xf32> to vector<64xf32>
      %18 = vector.shape_cast %17 : vector<64xf32> to vector<1x64xf32>
      %c0_17 = arith.constant 0 : index
      %c0_18 = arith.constant 0 : index
      %c0_19 = arith.constant 0 : index
      %c0_20 = arith.constant 0 : index
      %19 = vector.load %arg4[%c0_17, %c0_18, %c0_19, %c0_20] : memref<1x1x1x64xf32, #tpu.memory_space<vmem>>, vector<1x1x1x64xf32>
      %20 = vector.shape_cast %19 : vector<1x1x1x64xf32> to vector<1x64xf32>
      %21 = vector.shape_cast %18 : vector<1x64xf32> to vector<1x1x1x64xf32>
      tpu.vector_store %arg4[%c0_17, %c0_18, %c0_19, %c0_20], %21 {strides = array<i32>} : memref<1x1x1x64xf32, #tpu.memory_space<vmem>>, vector<1x1x1x64xf32>,
    } else {
    }
    return
  }
  func.func @transform_0(%arg0: i32, %arg1: i32, %arg2: i32) -> (i32, i32, i32) {
    %c0_i32 = arith.constant 0 : i32
    %c0_i32_0 = arith.constant 0 : i32
    return %arg0, %c0_i32, %arg2 : i32, i32, i32
  }
  func.func @transform_1(%arg0: i32, %arg1: i32, %arg2: i32) -> (i32, i32, i32, i32) {
    %c0_i32 = arith.constant 0 : i32
    %c0_i32_0 = arith.constant 0 : i32
    %c0_i32_1 = arith.constant 0 : i32
    return %arg0, %arg1, %c0_i32, %c0_i32_0 : i32, i32, i32, i32
  }
}

</mosaic_0001>

<bundles_post_ra>
// kernel: tpu_custom_call.1
= control target key start
LH: loop header
LB: loop body
LE: loop exit
PB: predicated region body
PF: predicated region fallthrough
CT: control target
= control target key end

     0   :  { %6 = vsyncpa [#allocation4], 0  ;;  %s803_s0 = inlined_call_operand.hbm [shape: f32[2,64,256], index: 0, kind: input, shape index: {}]   ;;  %s804_s1 = inlined_call_operand.hbm [shape: f32[2,1,1,64], index: 1, kind: output, shape index: {}]  }
   0x1   :  { %8 = vsyncpa [#allocation4 + $0x1], 0 }
   0x2   :  { %9 = vsyncpa [#allocation5], 0 }
   0x3   :  { %11 = vsyncpa [#allocation5 + $0x1], 0  ;;  %s629_s6 = smov 0   ;;  %s631_s7 = smov 0  }
   0x4   :  { %s633_s8 = smov 0   ;;  %s635_s9 = smov 0  }
   0x5   :  { %s637_s10 = smov 0   ;;  %s639_s11 = smov 0  }
   0x6 LB: > { %s424_s12 = sadd.s32 4294967295, %s613_s11   ;;  %s425_s13 = sadd.s32 4294967294, %s613_s11   ;;  %s613_s11 = sphi %s639_s11, %s17_s11   ;;  %s609_s10 = sphi %s637_s10, %s819_s10   ;;  %s605_s9 = sphi %s635_s9, %s818_s9   ;;  %s601_s8 = sphi %s633_s8, %s817_s8   ;;  %s597_s7 = sphi %s631_s7, %s816_s7   ;;  %s593_s6 = sphi %s629_s6, %s815_s6  }
   0x7   : > { %s36_s14 = sadd.s32 1, %s609_s10  ;;  %s45_s15 = sadd.s32 1, %s601_s8 }
   0x8   : > { %p38_p0 = scmp.ge.s32.totalorder %s36_s14, 2  ;;  %p52_p1 = scmp.ne.s32.totalorder %s601_s8, %s597_s7 }
   0x9   : > { %p53_p2 = scmp.eq.s32.totalorder %s613_s11, 0  ;;  %p58_p3 = scmp.ne.s32.totalorder %s597_s7, %s593_s6 }
   0xa   : > { %s821_s14 = smov (%p38_p0, %s36_s14), 0  ;;  %p59_p5 = scmp.eq.s32.totalorder %s424_s12, 0 }
   0xb   : > { %p670_p4 = por %p53_p2, %p52_p1  ;;  %s40_s17 = ssub.s32 %s609_s10, %s821_s14 }
   0xc   : > { %p84_p6 = scmp.eq.s32.totalorder %s424_s12, 1  ;;  %p43_p7 = scmp.eq.s32.totalorder %s40_s17, 0 }
   0xd   : > { %p676_p8 = por %p59_p5, %p58_p3  ;;  %p90_p10 = scmp.eq.s32.totalorder %s425_s13, 1 }
   0xe   : > { %p680_p9 = por %p84_p6, %p52_p1  ;;  %p449_p13 = scmp.lt.s32.totalorder %s613_s11, 2 }
   0xf   : > { %s685_s20 = scalar_select %p43_p7, %s601_s8, %s45_s15  }
  0x10   : > { %s808_s19 = scalar_select %p680_p9, 1, 0 }
  0x11   : > { %p687_p11 = por %p90_p10, %p58_p3  ;;  %s110_s22 = sand.u32 1, %s601_s8  }
  0x12   : > { %s428_s23 = sshll.u32 %s110_s22, 7  ;;  %s436_s24 = sshll.u32 %s609_s10, 11 }
  0x13   : > { %s809_s21 = scalar_select %p687_p11, 1, 0 }
  0x14   : > { %s698_s27 = scalar_lea.hbm %s803_s0, %s436_s24  ;;  %s114_s28 = scalar_lea.vmem [#allocation3], %s428_s23 }
  0x15   : > { %s123_s29 = sshll.u32 %s114_s28, 4  ;;  %p704_p0 = pnand %p449_p13, %p670_p4  ;;  %s700_s29 = int_to_ptr.vmem [resolvable:$true] %s123_s29 }
  0x16   : > { %s709_s2 = scalar_lea.sflag [#allocation4], %s110_s22  ;;  %s501_s3 = scalar_lea.hbm %s698_s27, 2048 }
  0x17   : > { %p502_p2 = scmp.ne.s32.totalorder %s698_s27, %s501_s3  ;;  %p503_p3 = pneg %p704_p0 }
  0x18   : > { %s506_s12 = scalar_lea.hbm %s803_s0, 4096  ;;  %p507_p4 = scmp.lt.u32.totalorder %s698_s27, %s803_s0 }
  0x19   : > { %p504_p5 = pnand %p503_p3, %p502_p2  ;;  %p508_p7 = scmp.lt.u32.totalorder %s506_s12, %s501_s3 }
  0x1a   : > { %p510_p13 = scmp.lt.u32.totalorder %s501_s3, %s698_s27 }
  0x1b   : > { %p505_p6 = pneg %p504_p5  ;;  %p509_p10 = por %p508_p7, %p507_p4 }
  0x1d   : > { %p511_p12 = por %p510_p13, %p509_p10 }
  0x1f   : > { %p512_p1 = pnand %p511_p12, %p505_p6 }
  0x21   : > { %515 = shalt.err (!%p512_p1)
}
  0x22   : > { %s516_s16 = scalar_lea.vmem %s700_s29, 2048  ;;  %s615_s17 = smov [#allocation3]  }
  0x23   : > { %p517_p2 = scmp.ne.s32.totalorder %s700_s29, %s516_s16  ;;  %s521_s22 = sshll.u32 %s615_s17, 4  ;;  %s522_s22 = int_to_ptr.vmem [resolvable:$false] %s521_s22 }
  0x24   : > { %s523_s23 = scalar_lea.vmem %s522_s22, 4096  ;;  %p524_p9 = scmp.lt.s32.totalorder %s700_s29, %s522_s22 }
  0x25   : > { %p519_p5 = pnand %p517_p2, %p503_p3  ;;  %p525_p4 = scmp.lt.s32.totalorder %s523_s23, %s516_s16 }
  0x27   : > { %p520_p11 = pneg %p519_p5  ;;  %p526_p7 = por %p525_p4, %p524_p9 }
  0x29   : > { %p527_p10 = pnand %p526_p7, %p520_p11 }
  0x2b   : > { %530 = shalt.err (!%p527_p10)
}
  0x2c   : > { %s616_s24 = smov 256   ;;  %s617_s25 = smov 16  }
  0x2d   : > { %444 = dma.hbm_to_vmem [thread:$0]  (!%p704_p0), %s698_s27, 2048, %s700_s29, %s709_s2, %s616_s24, %s616_s24, %s617_s25  }
  0x2e   : > { %p131_p12 = scmp.lt.s32.totalorder %s613_s11, 3  ;;  %p811_p1 = scmp.ge.s32.totalorder %s613_s11, 1 }
  0x30   : > { %p132_p3 = pnand %p811_p1, %p131_p12 }
  0x31   : > { %s741_s26 = sand.u32 (!%p132_p3), 1, %s597_s7  }
  0x32   : > { %135 = sbr.rel (%p132_p3) target bundleno = 233 (0xe9), region = 24  ;;  %s432_s28 = sshll.u32 (!%p132_p3), %s741_s26, 7 }
  0x33   : > { %s138_s3 = scalar_lea.sflag (!%p132_p3), [#allocation4], %s741_s26  ;;  %s141_s4 = scalar_lea.vmem (!%p132_p3), [#allocation3], %s432_s28 }
  0x39   : > { %584 = dma.done.wait (%p676_p8), %s138_s3, 2048  }
  0x3a   : > { %586 = vsyncadd (%p676_p8), %s138_s3, 4294965248  ;;  %v172_v0 = vld [vmem:[%s141_s4] sm:$0xff]  ;;  %v204_v1 = vld [vmem:[%s141_s4 + $0x8] sm:$0xff]  ;;  %v271_v24 = vlaneseq  ;;  %vm282_vm0 = vcmask 130112   ;;  %vm289_vm1 = vcmask 195712   ;;  %vm296_vm2 = vcmask 261312  }
  0x3b   : > { %v174_v2 = vld [vmem:[%s141_s4 + $0x20] sm:$0xff]  ;;  %v220_v3 = vadd.f32 %v204_v1, %v172_v0  ;;  %v206_v4 = vld [vmem:[%s141_s4 + $0x28] sm:$0xff]  ;;  %v173_v5 = vld [vmem:[%s141_s4 + $0x10] sm:$0xff]  ;;  %vm303_vm3 = vcmask 326912   ;;  %vm310_vm4 = vcmask 392512   ;;  %vm317_vm5 = vcmask 458112  }
  0x3c   : > { %v205_v6 = vld [vmem:[%s141_s4 + $0x18] sm:$0xff]  ;;  %v222_v7 = vadd.f32 %v206_v4, %v174_v2  ;;  %v175_v8 = vld [vmem:[%s141_s4 + $0x30] sm:$0xff]  ;;  %v176_v12 = vld [vmem:[%s141_s4 + $0x40] sm:$0xff]  ;;  %v272_v25 = vand.u32 127, %v271_v24  ;;  %v274_v26 = vshrl.u32 %v271_v24, 7  ;;  %s433_s18 = sshll.u32 %s605_s9, 4 }
  0x3d   : > { %v207_v9 = vld [vmem:[%s141_s4 + $0x38] sm:$0xff]  ;;  %247 = vadd.xlane.f32.xlu0 %v220_v3  ;;  %v221_v10 = vadd.f32 %v205_v6, %v173_v5  ;;  %v208_v13 = vld [vmem:[%s141_s4 + $0x48] sm:$0xff]  ;;  %v177_v14 = vld [vmem:[%s141_s4 + $0x50] sm:$0xff]  ;;  %s158_s27 = scalar_lea.vmem [#allocation6], %s741_s26  ;;  %vm324_vm6 = vcmask 523712   ;;  %vm327_vm7 = vcmask 516096   ;;  %s754_s5 = scalar_lea.hbm %s804_s1, %s433_s18 }
  0x3e   : > { %251 = vadd.xlane.f32.xlu1 %v222_v7  ;;  %v223_v11 = vadd.f32 %v207_v9, %v175_v8  ;;  %v209_v15 = vld [vmem:[%s141_s4 + $0x58] sm:$0xff]  ;;  %v224_v16 = vadd.f32 %v208_v13, %v176_v12  ;;  %v178_v18 = vld [vmem:[%s141_s4 + $0x60] sm:$0xff]  ;;  %v210_v19 = vld [vmem:[%s141_s4 + $0x68] sm:$0xff]  ;;  %v277_v27 = vadd.s32 4294967288, %v272_v25  ;;  %v284_v28 = vadd.s32 4294967280, %v272_v25  ;;  %s343_s29 = sshll.u32 %s158_s27, 4  ;;  %s756_s29 = int_to_ptr.vmem [resolvable:$true] %s343_s29 }
  0x3f   : > { %v225_v17 = vadd.f32 %v209_v15, %v177_v14  ;;  %v179_v20 = vld [vmem:[%s141_s4 + $0x70] sm:$0xff]  ;;  %v211_v21 = vld [vmem:[%s141_s4 + $0x78] sm:$0xff]  ;;  %v226_v22 = vadd.f32 %v210_v19, %v178_v18  ;;  %v291_v29 = vadd.s32 4294967272, %v272_v25  ;;  %v275_v31 = vsub.s32 %v272_v25, %v274_v26  ;;  %s330_s9 = scalar_lea.sflag [#allocation5], %s741_s26  ;;  %s531_s12 = scalar_lea.vmem %s756_s29, 16 }
  0x40   : > { %v227_v23 = vadd.f32 %v211_v21, %v179_v20  ;;  %v280_v33 = vsub.s32 %v277_v27, %v274_v26  ;;  %v298_v34 = vadd.s32 4294967264, %v272_v25  ;;  %v287_v35 = vsub.s32 %v284_v28, %v274_v26  ;;  %p532_p8 = scmp.ne.s32.totalorder %s756_s29, %s531_s12  ;;  %p812_p9 = scmp.ne.s32.totalorder %s808_s19, 0 }
  0x41   : > { %249 = vadd.xlane.f32.xlu0 %v221_v10  ;;  %v294_v36 = vsub.s32 %v291_v29, %v274_v26  ;;  %v305_v37 = vadd.s32 4294967256, %v272_v25  ;;  %v312_v43 = vadd.s32 4294967248, %v272_v25  ;;  %v319_v47 = vadd.s32 4294967240, %v272_v25  ;;  %s618_s13 = smov [#allocation6]  }
  0x42   : > { %253 = vadd.xlane.f32.xlu1 %v223_v11  ;;  %v301_v42 = vsub.s32 %v298_v34, %v274_v26  ;;  %p533_p11 = pnand %p532_p8, %p812_p9  ;;  %s535_s15 = sshll.u32 %s618_s13, 4  ;;  %s536_s15 = int_to_ptr.vmem [resolvable:$false] %s535_s15 }
  0x43   : > { %v308_v46 = vsub.s32 %v305_v37, %v274_v26  ;;  %v315_v54 = vsub.s32 %v312_v43, %v274_v26  ;;  %v322_v56 = vsub.s32 %v319_v47, %v274_v26  ;;  %s537_s16 = scalar_lea.vmem %s536_s15, 32  ;;  %p538_p6 = scmp.lt.s32.totalorder %s756_s29, %s536_s15 }
  0x44   : > { %p534_p0 = pneg %p533_p11  ;;  %p539_p13 = scmp.lt.s32.totalorder %s537_s16, %s531_s12 }
  0x45   : > { %255 = vadd.xlane.f32.xlu0 %v224_v16 }
  0x46   : > { %257 = vadd.xlane.f32.xlu1 %v225_v17  ;;  %p540_p2 = por %p539_p13, %p538_p6 }
  0x48   : > { %p541_p5 = pnand %p540_p2, %p534_p0 }
  0x49   : > { %259 = vadd.xlane.f32.xlu0 %v226_v22 }
  0x4a   : > { %261 = vadd.xlane.f32.xlu1 %v227_v23 }
  0xca   : > { %v248_v30 = vpop.xlane.xlu0 %247 }
  0xcb   : > { %v252_v32 = vpop.xlane.xlu1 %251  ;;  %v276_v39 = vrot.slane %v248_v30, %v275_v31 }
  0xcc   : > { %v288_v44 = vrot.slane %v252_v32, %v287_v35 }
  0xce   : > { %v250_v38 = vpop.xlane.xlu0 %249 }
  0xcf   : > { %v281_v40 = vrot.slane %v250_v38, %v280_v33  ;;  %v254_v41 = vpop.xlane.xlu1 %253 }
  0xd0   : > { %v295_v45 = vrot.slane %v254_v41, %v294_v36 }
  0xd1   : > { %v283_v48 = vsel %vm282_vm0, %v281_v40, %v276_v39 }
  0xd2   : > { %v290_v49 = vsel %vm289_vm1, %v288_v44, %v283_v48  ;;  %v256_v50 = vpop.xlane.xlu0 %255 }
  0xd3   : > { %v297_v51 = vsel %vm296_vm2, %v295_v45, %v290_v49  ;;  %v302_v52 = vrot.slane %v256_v50, %v301_v42  ;;  %v258_v53 = vpop.xlane.xlu1 %257 }
  0xd4   : > { %v309_v55 = vrot.slane %v258_v53, %v308_v46 }
  0xd5   : > { %v304_v57 = vsel %vm303_vm3, %v302_v52, %v297_v51 }
  0xd6   : > { %v260_v58 = vpop.xlane.xlu0 %259  ;;  %v311_v61 = vsel %vm310_vm4, %v309_v55, %v304_v57 }
  0xd7   : > { %v316_v59 = vrot.slane %v260_v58, %v315_v54  ;;  %v262_v60 = vpop.xlane.xlu1 %261 }
  0xd8   : > { %v323_v62 = vrot.slane %v262_v60, %v322_v56 }
  0xd9   : > { %v318_v63 = vsel %vm317_vm5, %v316_v59, %v311_v61 }
  0xda   : > { %v325_v0 = vsel %vm324_vm6, %v323_v62, %v318_v63 }
  0xdb   : > { %328 = vst.msk [vmem:[%s158_s27] sm:$0x1] %vm327_vm7, %v325_v0 }
  0xdc   : > { %544 = shalt.err (!%p541_p5)
}
  0xdd   : > { %s545_s17 = scalar_lea.hbm %s754_s5, 16  ;;  %s549_s24 = scalar_lea.hbm %s804_s1, 32 }
  0xde   : > { %p546_p4 = scmp.ne.s32.totalorder %s754_s5, %s545_s17  ;;  %p550_p12 = scmp.lt.u32.totalorder %s754_s5, %s804_s1 }
  0xdf   : > { %p551_p1 = scmp.lt.u32.totalorder %s549_s24, %s545_s17  ;;  %p553_p8 = scmp.lt.u32.totalorder %s545_s17, %s754_s5 }
  0xe0   : > { %p547_p7 = pnand %p546_p4, %p812_p9 }
  0xe1   : > { %p552_p3 = por %p551_p1, %p550_p12 }
  0xe2   : > { %p548_p10 = pneg %p547_p7 }
  0xe3   : > { %p554_p11 = por %p553_p8, %p552_p3 }
  0xe5   : > { %p555_p0 = pnand %p554_p11, %p548_p10 }
  0xe7   : > { %558 = shalt.err (!%p555_p0)
}
  0xe8   : > { %439 = dma.vmem_to_hbm [thread:$0]  (%p812_p9), %s756_s29, 16, %s754_s5, %s330_s9  }
  0xe9 PF: > { %s355_s28 = sand.u32 1, %s593_s6   ;;  %p813_p6 = scmp.ne.s32.totalorder %s809_s21, 0 }
  0xea   : > { %p814_p13 = scmp.ge.s32.totalorder %s613_s11, 2  ;;  %s356_s3 = scalar_lea.sflag [#allocation5], %s355_s28 }
  0xec   : > { %p446_p2 = pnand %p814_p13, %p813_p6 }
  0xee   : > { %588 = dma.done.wait (!%p446_p2), %s356_s3, 16  }
  0xef   : > { %590 = vsyncadd (!%p446_p2), %s356_s3, 4294967280  ;;  %s17_s11 = sadd.s32 1, %s613_s11   ;;  %s815_s6 = smov %s597_s7 }
  0xf0   : > { %p14_p5 = scmp.ge.s32.totalorder %s17_s11, 4   ;;  %s816_s7 = smov %s601_s8 }
  0xf1   : > { %s817_s8 = smov %s685_s20  ;;  %s818_s9 = smov %s609_s10 }
  0xf2   : > { %s819_s10 = smov %s821_s14  ;;  %16 = sbr.rel (!%p14_p5) target bundleno = 6 (0x6), region = 77 }
  0xf9   :  { %360 = vsyncpa [#allocation4], 1 }
  0xfa   :  { %362 = vsyncpa [#allocation4 + $0x1], 1 }
  0xfb   :  { %363 = vsyncpa [#allocation5], 1 }
  0xfc   :  { %365 = vsyncpa [#allocation5 + $0x1], 1 }

</bundles_post_ra>
